<compile_context>
chip_gen: v7x
topology: tpu7x:2x2x1
jax: 0.10.0
libtpu: 0.0.40
codegen_flags: <defaults>
</compile_context>

<pallas_src>
import math
import functools

import jax
import jax.numpy as jnp
from jax.experimental import pallas as pl
from jax.experimental.pallas import tpu as pltpu


# ---------------------------------------------------------------------------
# Shared-range-reduction sin/cos (all VALU; accurate to ~1e-6 for |theta| <~ 1e4).
# ---------------------------------------------------------------------------
_INV_PI = 0.3183098861837907
_PI_HI = 3.140625                    # exact in f32 (8 mantissa bits) -> k*PI_HI exact
_PI_LO = 9.676535897932e-4           # pi - _PI_HI


def _shared_sincos(theta):
    """Return (sin(theta), cos(theta)) with ONE shared Cody-Waite reduction by pi
    and two short Taylor polynomials on [-pi/2, pi/2]."""
    k = jnp.floor(theta * _INV_PI + 0.5)          # nearest integer multiple of pi
    r = (theta - k * _PI_HI) - k * _PI_LO         # |r| <= pi/2 (+tiny), error ~1 ulp
    r2 = r * r
    # sin(theta) = (-1)^k sin(r);  cos(theta) = (-1)^k cos(r)
    sign = 1.0 - 2.0 * (k.astype(jnp.int32) & 1).astype(theta.dtype)
    sin_r = r * (1.0 + r2 * (-1.0 / 6.0 + r2 * (1.0 / 120.0 + r2 * (-1.0 / 5040.0
                  + r2 * (1.0 / 362880.0 + r2 * (-1.0 / 39916800.0))))))
    cos_r = 1.0 + r2 * (-0.5 + r2 * (1.0 / 24.0 + r2 * (-1.0 / 720.0
                  + r2 * (1.0 / 40320.0 + r2 * (-1.0 / 3628800.0
                  + r2 * (1.0 / 479001600.0))))))
    return sign * sin_r, sign * cos_r


def _sinusoidal_kernel(x_ref, freqs_ref, out_ref, *, half_dim, transposed):
    if transposed:
        # x_ref: (1, TILE_B)  freqs_ref: (half_dim, 1)  out_ref: (output, TILE_B)
        phase = freqs_ref[...] * x_ref[...]          # (half_dim, TILE_B), lane-dense
    else:
        # x_ref: (TILE_B, 1)  freqs_ref: (1, half_dim)  out_ref: (TILE_B, output)
        phase = x_ref[...] * freqs_ref[...]          # (TILE_B, half_dim)
    sin_p, cos_p = _shared_sincos(phase)
    dt = out_ref.dtype
    if transposed:
        # Halves split along sublanes; lane axis (batch) fully dense + aligned.
        out_ref[:half_dim, :] = cos_p.astype(dt)
        out_ref[half_dim:, :] = sin_p.astype(dt)
    else:
        # Lane-dense & lane-aligned iff half_dim % 128 == 0 (wrapper picks this
        # path for that case, or for small B where it does not matter).
        out_ref[:, :half_dim] = cos_p.astype(dt)
        out_ref[:, half_dim:] = sin_p.astype(dt)


# ---------------------------------------------------------------------------
# Tiling helpers.
# ---------------------------------------------------------------------------
def _round_up(n, m):
    return ((n + m - 1) // m) * m


def _pick_tile(b, cap, granule):
    """Batch tile: multiple of `granule` (8 rows / 128 lanes) or the full batch;
    grid >= 2 whenever b > granule (feed both v7x TensorCores); prefers
    b % tile == 0 so every block is full (unmasked writeback)."""
    if b <= granule:
        return b                                   # single block == full array
    cap = max(granule, cap)
    hi = min(cap, _round_up(-(-b // 2), granule))  # at most ceil(b/2) -> grid >= 2
    hi = max(granule, (hi // granule) * granule)
    t = hi
    while t >= granule:                            # tiny trace-time divisor search
        if b % t == 0:
            return t
        t -= granule
    return hi                                      # last block partial (masked, benign)


# ---------------------------------------------------------------------------
# Wrapper.
# ---------------------------------------------------------------------------
def sinusoidal_pos_emb(x, output_size, *, out_dtype=jnp.float32, tile_b=512):
    """x: (B, 1) float -> (B, output_size), cos-then-sin layout (BearRobot order)."""
    assert x.ndim == 2 and x.shape[1] == 1, "expected (B, 1) timesteps"
    assert output_size % 2 == 0, "output_size must be even"
    half_dim = output_size // 2
    assert half_dim > 1, "output_size must be >= 4 (half_dim - 1 divisor)"

    b = x.shape[0]
    x = x.astype(jnp.float32)

    # Batch-invariant frequency table, computed once in the wrapper (EUP work hoisted).
    neg_log_factor = -(math.log(10000.0) / (half_dim - 1))
    freqs = jnp.exp(jnp.arange(half_dim, dtype=jnp.float32) * neg_log_factor)

    # Layout choice: row layout when the stores are already lane-dense/aligned
    # (half_dim % 128 == 0) or when B is too small for a lane-dense batch axis.
    row_layout = (half_dim % 128 == 0) or (b < 256)
    granule = 8 if row_layout else 128
    x_pad = 128 if row_layout else 8               # padded minor extent of the x block

    # VMEM budget: double-buffered in+out blocks must sit well inside v7x's 32 MiB
    # scoped default (64 MiB physical); 16 MiB leaves pipelining/compiler headroom.
    vmem_budget = 16 * 1024 * 1024
    bytes_per_slice = 2 * 4 * (output_size + x_pad)          # 2x: double-buffered
    cap = max(granule, (vmem_budget // bytes_per_slice) // granule * granule)
    tile = _pick_tile(b, min(tile_b, cap), granule)
    grid = (pl.cdiv(b, tile),)

    kernel = functools.partial(_sinusoidal_kernel, half_dim=half_dim,
                               transposed=not row_layout)
    cost = pl.CostEstimate(
        flops=40 * b * half_dim,                   # shared reduction + 2 polys (VALU)
        transcendentals=0,                         # exp hoisted; trig is VALU work
        bytes_accessed=4 * (b + half_dim)
        + b * output_size * jnp.dtype(out_dtype).itemsize,
    )
    params = pltpu.CompilerParams(dimension_semantics=("parallel",))

    if row_layout:
        return pl.pallas_call(
            kernel,
            out_shape=jax.ShapeDtypeStruct((b, output_size), out_dtype),
            grid=grid,
            in_specs=[
                pl.BlockSpec((tile, 1), lambda i: (i, 0)),
                pl.BlockSpec((1, half_dim), lambda i: (0, 0)),   # VMEM-resident
            ],
            out_specs=pl.BlockSpec((tile, output_size), lambda i: (i, 0)),
            compiler_params=params,
            cost_estimate=cost,
        )(x, freqs[None, :])

    out_t = pl.pallas_call(
        kernel,
        out_shape=jax.ShapeDtypeStruct((output_size, b), out_dtype),
        grid=grid,
        in_specs=[
            pl.BlockSpec((1, tile), lambda i: (0, i)),           # x as lane-dense row
            pl.BlockSpec((half_dim, 1), lambda i: (0, 0)),       # VMEM-resident
        ],
        out_specs=pl.BlockSpec((output_size, tile), lambda i: (0, i)),
        compiler_params=params,
        cost_estimate=cost,
    )(x.reshape(1, b), freqs[:, None])
    # Layout plumbing back to the module's (B, output_size) contract; ideally the
    # consumer would take the transposed slab directly (or the embedding is fused).
    return out_t.T


def _reference(x, output_size):
    # Mirrors the BearRobot PyTorch module exactly: cos first, then sin.
    half_dim = output_size // 2
    f = math.log(10000.0) / (half_dim - 1)
    f = jnp.exp(jnp.arange(half_dim, dtype=jnp.float32) * -f)
    f = x.astype(jnp.float32) * f[None, :]
    return jnp.concatenate([jnp.cos(f), jnp.sin(f)], axis=-1)


if __name__ == "__main__":
    # SinusoidalPosEmb has no learned parameters; only the timestep input is needed.
    key = jax.random.PRNGKey(0)
    B, OUT = 8, 32                                            # half_dim = 16
    x = jax.random.uniform(key, (B, 1), dtype=jnp.float32) * 1000.0

    out = jax.block_until_ready(sinusoidal_pos_emb(x, OUT))
    ref = _reference(x, OUT)
    assert out.shape == (B, OUT) and out.dtype == jnp.float32
    assert jnp.allclose(out, ref, atol=1e-5, rtol=1e-5), "mismatch (row path)"

    # Multi-block row path (grid >= 2, b % tile == 0 -> unmasked writeback).
    B2 = 24
    x2 = jax.random.uniform(jax.random.PRNGKey(1), (B2, 1), dtype=jnp.float32) * 1000.0
    out2 = jax.block_until_ready(sinusoidal_pos_emb(x2, OUT))
    assert jnp.allclose(out2, _reference(x2, OUT), atol=1e-5, rtol=1e-5), \
        "mismatch (multi-block row path)"

    # Transposed lane-dense path (small output_size, larger batch -> batch on lanes).
    B3 = 256
    x3 = jax.random.uniform(jax.random.PRNGKey(2), (B3, 1), dtype=jnp.float32) * 1000.0
    out3 = jax.block_until_ready(sinusoidal_pos_emb(x3, OUT))
    assert out3.shape == (B3, OUT)
    assert jnp.allclose(out3, _reference(x3, OUT), atol=1e-5, rtol=1e-5), \
        "mismatch (transposed path)"

    # Optional bf16 output (halved HBM writeback); compare at bf16 resolution.
    out_bf16 = jax.block_until_ready(
        sinusoidal_pos_emb(x, OUT, out_dtype=jnp.bfloat16))
    assert out_bf16.dtype == jnp.bfloat16
    assert jnp.allclose(out_bf16.astype(jnp.float32), ref, atol=1e-2, rtol=1e-2), \
        "mismatch (bf16 path)"

    print("KERNEL_OK")
</pallas_src>

<mosaic_0001>
module attributes {stable_mosaic.version = 11 : i64} {
  func.func @_sinusoidal_kernel(%arg0: i32, %arg1: memref<8x1xf32, #tpu.memory_space<vmem>>, %arg2: memref<1x16xf32, #tpu.memory_space<vmem>>, %arg3: memref<8x32xf32, #tpu.memory_space<vmem>>) attributes {dimension_semantics = [#tpu.dimension_semantics<parallel>], iteration_bounds = array<i64: 1>, scalar_prefetch = 0 : i64, scratch_operands = 0 : i64, tpu.core_type = #tpu.core_type<tc>, window_params = [{transform_indices = @transform_0, window_bounds = array<i64: 8, 1>}, {pipeline_mode = #tpu.pipeline_mode<synchronous>, transform_indices = @transform_1, window_bounds = array<i64: 1, 16>}, {transform_indices = @transform_2, window_bounds = array<i64: 8, 32>}]} {
    %c0 = arith.constant 0 : index
    %c0_0 = arith.constant 0 : index
    %0 = vector.load %arg1[%c0, %c0_0] : memref<8x1xf32, #tpu.memory_space<vmem>>, vector<8x1xf32>
    %c0_1 = arith.constant 0 : index
    %c0_2 = arith.constant 0 : index
    %1 = vector.load %arg2[%c0_1, %c0_2] : memref<1x16xf32, #tpu.memory_space<vmem>>, vector<1x16xf32>
    %2 = vector.broadcast %0 : vector<8x1xf32> to vector<8x16xf32>
    %3 = vector.broadcast %1 : vector<1x16xf32> to vector<8x16xf32>
    %4 = arith.mulf %2, %3 : vector<8x16xf32>
    %cst = arith.constant 0.318309873 : f32
    %5 = vector.broadcast %cst : f32 to vector<8x16xf32>
    %6 = arith.mulf %4, %5 : vector<8x16xf32>
    %cst_3 = arith.constant 5.000000e-01 : f32
    %7 = vector.broadcast %cst_3 : f32 to vector<8x16xf32>
    %8 = arith.addf %6, %7 : vector<8x16xf32>
    %9 = math.floor %8 : vector<8x16xf32>
    %cst_4 = arith.constant 3.140625 : f32
    %10 = vector.broadcast %cst_4 : f32 to vector<8x16xf32>
    %11 = arith.mulf %9, %10 : vector<8x16xf32>
    %12 = arith.subf %4, %11 : vector<8x16xf32>
    %cst_5 = arith.constant 9.67653584E-4 : f32
    %13 = vector.broadcast %cst_5 : f32 to vector<8x16xf32>
    %14 = arith.mulf %9, %13 : vector<8x16xf32>
    %15 = arith.subf %12, %14 : vector<8x16xf32>
    %16 = arith.mulf %15, %15 : vector<8x16xf32>
    %17 = arith.fptosi %9 : vector<8x16xf32> to vector<8x16xi32>
    %c1_i32 = arith.constant 1 : i32
    %18 = vector.broadcast %c1_i32 : i32 to vector<8x16xi32>
    %19 = arith.andi %17, %18 : vector<8x16xi32>
    %20 = arith.sitofp %19 : vector<8x16xi32> to vector<8x16xf32>
    %cst_6 = arith.constant 2.000000e+00 : f32
    %21 = vector.broadcast %cst_6 : f32 to vector<8x16xf32>
    %22 = arith.mulf %21, %20 : vector<8x16xf32>
    %cst_7 = arith.constant 1.000000e+00 : f32
    %23 = vector.broadcast %cst_7 : f32 to vector<8x16xf32>
    %24 = arith.subf %23, %22 : vector<8x16xf32>
    %cst_8 = arith.constant -2.50521079E-8 : f32
    %25 = vector.broadcast %cst_8 : f32 to vector<8x16xf32>
    %26 = arith.mulf %16, %25 : vector<8x16xf32>
    %cst_9 = arith.constant 2.75573188E-6 : f32
    %27 = vector.broadcast %cst_9 : f32 to vector<8x16xf32>
    %28 = arith.addf %27, %26 : vector<8x16xf32>
    %29 = arith.mulf %16, %28 : vector<8x16xf32>
    %cst_10 = arith.constant -1.98412701E-4 : f32
    %30 = vector.broadcast %cst_10 : f32 to vector<8x16xf32>
    %31 = arith.addf %30, %29 : vector<8x16xf32>
    %32 = arith.mulf %16, %31 : vector<8x16xf32>
    %cst_11 = arith.constant 0.00833333377 : f32
    %33 = vector.broadcast %cst_11 : f32 to vector<8x16xf32>
    %34 = arith.addf %33, %32 : vector<8x16xf32>
    %35 = arith.mulf %16, %34 : vector<8x16xf32>
    %cst_12 = arith.constant -0.166666672 : f32
    %36 = vector.broadcast %cst_12 : f32 to vector<8x16xf32>
    %37 = arith.addf %36, %35 : vector<8x16xf32>
    %38 = arith.mulf %16, %37 : vector<8x16xf32>
    %cst_13 = arith.constant 1.000000e+00 : f32
    %39 = vector.broadcast %cst_13 : f32 to vector<8x16xf32>
    %40 = arith.addf %39, %38 : vector<8x16xf32>
    %41 = arith.mulf %15, %40 : vector<8x16xf32>
    %cst_14 = arith.constant 2.08767559E-9 : f32
    %42 = vector.broadcast %cst_14 : f32 to vector<8x16xf32>
    %43 = arith.mulf %16, %42 : vector<8x16xf32>
    %cst_15 = arith.constant -2.755732E-7 : f32
    %44 = vector.broadcast %cst_15 : f32 to vector<8x16xf32>
    %45 = arith.addf %44, %43 : vector<8x16xf32>
    %46 = arith.mulf %16, %45 : vector<8x16xf32>
    %cst_16 = arith.constant 2.48015876E-5 : f32
    %47 = vector.broadcast %cst_16 : f32 to vector<8x16xf32>
    %48 = arith.addf %47, %46 : vector<8x16xf32>
    %49 = arith.mulf %16, %48 : vector<8x16xf32>
    %cst_17 = arith.constant -0.00138888892 : f32
    %50 = vector.broadcast %cst_17 : f32 to vector<8x16xf32>
    %51 = arith.addf %50, %49 : vector<8x16xf32>
    %52 = arith.mulf %16, %51 : vector<8x16xf32>
    %cst_18 = arith.constant 0.0416666679 : f32
    %53 = vector.broadcast %cst_18 : f32 to vector<8x16xf32>
    %54 = arith.addf %53, %52 : vector<8x16xf32>
    %55 = arith.mulf %16, %54 : vector<8x16xf32>
    %cst_19 = arith.constant -5.000000e-01 : f32
    %56 = vector.broadcast %cst_19 : f32 to vector<8x16xf32>
    %57 = arith.addf %56, %55 : vector<8x16xf32>
    %58 = arith.mulf %16, %57 : vector<8x16xf32>
    %cst_20 = arith.constant 1.000000e+00 : f32
    %59 = vector.broadcast %cst_20 : f32 to vector<8x16xf32>
    %60 = arith.addf %59, %58 : vector<8x16xf32>
    %61 = arith.mulf %24, %41 : vector<8x16xf32>
    %62 = arith.mulf %24, %60 : vector<8x16xf32>
    %c0_21 = arith.constant 0 : index
    %c0_22 = arith.constant 0 : index
    %63 = vector.load %arg3[%c0_21, %c0_22] : memref<8x32xf32, #tpu.memory_space<vmem>>, vector<8x16xf32>
    tpu.vector_store %arg3[%c0_21, %c0_22], %62 {strides = array<i32>} : memref<8x32xf32, #tpu.memory_space<vmem>>, vector<8x16xf32>,
    %c0_23 = arith.constant 0 : index
    %c16 = arith.constant 16 : index
    %64 = vector.load %arg3[%c0_23, %c16] : memref<8x32xf32, #tpu.memory_space<vmem>>, vector<8x16xf32>
    tpu.vector_store %arg3[%c0_23, %c16], %61 {strides = array<i32>} : memref<8x32xf32, #tpu.memory_space<vmem>>, vector<8x16xf32>,
    return
  }
  func.func @transform_0(%arg0: i32) -> (i32, i32) {
    %c0_i32 = arith.constant 0 : i32
    %c0_i32_0 = arith.constant 0 : i32
    return %arg0, %c0_i32 : i32, i32
  }
  func.func @transform_1(%arg0: i32) -> (i32, i32) {
    %c0_i32 = arith.constant 0 : i32
    %c0_i32_0 = arith.constant 0 : i32
    %c0_i32_1 = arith.constant 0 : i32
    return %c0_i32, %c0_i32_0 : i32, i32
  }
  func.func @transform_2(%arg0: i32) -> (i32, i32) {
    %c0_i32 = arith.constant 0 : i32
    %c0_i32_0 = arith.constant 0 : i32
    return %arg0, %c0_i32 : i32, i32
  }
}

</mosaic_0001>

<bundles_post_ra>
// kernel: tpu_custom_call.1
= control target key start
LH: loop header
LB: loop body
LE: loop exit
PB: predicated region body
PF: predicated region fallthrough
CT: control target
= control target key end

     0   :  { %s153_s0 = inlined_call_operand.vmem [shape: f32[8,1], index: 0, kind: input, shape index: {}]   ;;  %s154_s1 = inlined_call_operand.vmem [shape: f32[1,16], index: 1, kind: input, shape index: {}]   ;;  %s155_s2 = inlined_call_operand.hbm [shape: f32[8,32], index: 2, kind: output, shape index: {}]  }
   0x1   :  { %v12_v0 = vld [vmem:[%s153_s0] sm:$0xff] }
   0x2   :  { %7 = vsyncpa [#allocation3], 0  ;;  %v117_v1 = vmov 0   ;;  %v86_v2 = vld [vmem:[%s154_s1] ss:$0 sm:$0xff]  ;;  %vm64_vm0 = vcmask 130048  }
   0x3   :  { %92 = vset.pattern.permute.xlu0 %v117_v1  ;;  %s118_s0 = smov 16   ;;  %s119_s1 = smov [#allocation2]   ;;  %vm70_vm1 = vcmask 261248  }
   0x4   :  { %16 = vperm.xlu0 %92, %v12_v0   ;;  %s78_s13 = sshll.u32 %s119_s1, 4  ;;  %s79_s13 = int_to_ptr.vmem [resolvable:$true] %s78_s13 }
   0x5   :  { %s93_s14 = scalar_lea.vmem %s79_s13, 128  ;;  %p98_p1 = scmp.lt.s32.totalorder %s79_s13, %s79_s13 }
   0x6   :  { %p94_p0 = scmp.ne.s32.totalorder %s79_s13, %s93_s14  ;;  %p99_p2 = scmp.lt.s32.totalorder %s93_s14, %s93_s14 }
   0x8   :  { %p100_p3 = por %p99_p2, %p98_p1 }
   0xa   :  { %p101_p4 = pnand %p100_p3, %p94_p0 }
  0x83   :  { %v17_v3 = vpop.permute.xlu0 %16 }
  0x84   :  { %v25_v4 = vmul.f32 %v86_v2, %v17_v3 }
  0x86   :  { %v26_v5 = vmul.f32 0.31830987, %v25_v4 }
  0x88   :  { %v27_v6 = vadd.f32 0.5, %v26_v5 }
  0x8a   :  { %v28_v7 = vfloor.f32 %v27_v6 }
  0x8c   :  { %v29_v8 = vmul.f32 3.140625, %v28_v7  ;;  %v31_v10 = vmul.f32 0.0009676536, %v28_v7  ;;  %v87_v13 = vtrunc.f32 %v28_v7 }
  0x8e   :  { %v30_v9 = vsub.f32 %v25_v4, %v29_v8  ;;  %v88_v18 = vcvt.f32.s32 %v87_v13 }
  0x90   :  { %v32_v11 = vsub.f32 %v30_v9, %v31_v10  ;;  %v35_v23 = vand.u32 1, %v88_v18 }
  0x92   :  { %v33_v12 = vmul.f32 %v32_v11, %v32_v11  ;;  %v36_v28 = vcvt.s32.f32 %v35_v23 }
  0x94   :  { %v39_v14 = vmul.f32 -2.5052108e-08, %v33_v12  ;;  %v50_v15 = vmul.f32 2.0876756e-09, %v33_v12  ;;  %v37_v33 = vmul.f32 2.0, %v36_v28 }
  0x96   :  { %v40_v16 = vadd.f32 2.7557319e-06, %v39_v14  ;;  %v51_v17 = vadd.f32 -2.755732e-07, %v50_v15  ;;  %v38_v38 = vsub.f32 1.0, %v37_v33 }
  0x98   :  { %v41_v19 = vmul.f32 %v40_v16, %v33_v12  ;;  %v52_v20 = vmul.f32 %v51_v17, %v33_v12 }
  0x9a   :  { %v42_v21 = vadd.f32 -0.0001984127, %v41_v19  ;;  %v53_v22 = vadd.f32 2.4801588e-05, %v52_v20 }
  0x9c   :  { %v43_v24 = vmul.f32 %v42_v21, %v33_v12  ;;  %v54_v25 = vmul.f32 %v53_v22, %v33_v12 }
  0x9e   :  { %v44_v26 = vadd.f32 0.008333334, %v43_v24  ;;  %v55_v27 = vadd.f32 -0.0013888889, %v54_v25 }
  0xa0   :  { %v45_v29 = vmul.f32 %v44_v26, %v33_v12  ;;  %v56_v30 = vmul.f32 %v55_v27, %v33_v12 }
  0xa2   :  { %v46_v31 = vadd.f32 -0.16666667, %v45_v29  ;;  %v57_v32 = vadd.f32 0.041666668, %v56_v30 }
  0xa4   :  { %v47_v34 = vmul.f32 %v46_v31, %v33_v12  ;;  %v58_v35 = vmul.f32 %v57_v32, %v33_v12 }
  0xa6   :  { %v48_v36 = vadd.f32 1.0, %v47_v34  ;;  %v59_v37 = vadd.f32 -0.5, %v58_v35 }
  0xa8   :  { %v49_v39 = vmul.f32 %v48_v36, %v32_v11  ;;  %v60_v40 = vmul.f32 %v59_v37, %v33_v12 }
  0xaa   :  { %v62_v41 = vmul.f32 %v49_v39, %v38_v38  ;;  %v61_v42 = vadd.f32 1.0, %v60_v40 }
  0xac   :  { %67 = vrot.lane.b32.xlu0 %v62_v41, %s118_s0  ;;  %v63_v43 = vmul.f32 %v61_v42, %v38_v38 }
  0xae   :  { %65 = vst.msk [vmem:[#allocation2] sm:$0xff] %vm64_vm0, %v63_v43 }
 0x11e   :  { %v68_v44 = vpop.permute.xlu0 %67 }
 0x11f   :  { %71 = vst.msk [vmem:[#allocation2] sm:$0xff] %vm70_vm1, %v68_v44 }
 0x120   :  { %104 = shalt.err (!%p101_p4)
}
 0x121   :  { %s105_s17 = scalar_lea.hbm %s155_s2, 128 }
 0x122   :  { %p106_p5 = scmp.ne.s32.totalorder %s155_s2, %s105_s17  ;;  %p109_p6 = scmp.lt.u32.totalorder %s105_s17, %s155_s2 }
 0x124   :  { %p111_p7 = pnand %p109_p6, %p106_p5 }
 0x126   :  { %114 = shalt.err (!%p111_p7)
}
 0x127   :  { %81 = dma.vmem_to_hbm [thread:$0]  %s79_s13, 128, %s155_s2, [#allocation3]  }
 0x128   :  { %115 = dma.done.wait [#allocation3], 128  }
 0x129   :  { %116 = vsyncadd [#allocation3], 4294967168 }
 0x12a   :  { %85 = vsyncpa [#allocation3], 1 }

</bundles_post_ra>
